<compile_context>
chip_gen: v6e
topology: v6e:2x2x1
jax: 0.10.0
libtpu: 0.0.40
codegen_flags: <defaults>
</compile_context>

<pallas_src>
import jax
import jax.numpy as jnp
from jax.experimental import pallas as pl
from jax.experimental.pallas import tpu as pltpu


def dqn_kernel(x_ref, w1_ref, b1_ref, w2_ref, b2_ref, o_ref):
    # fc1: x @ W1 + b1, then ReLU  (b1 is [1, H] -> broadcasts over rows)
    h = jnp.dot(x_ref[...], w1_ref[...], preferred_element_type=jnp.float32)
    h = jnp.maximum(h + b1_ref[...], 0.0)
    # fc2: h @ W2 + b2  (output kept at its natural width A; no lane padding)
    out = jnp.dot(h, w2_ref[...], preferred_element_type=jnp.float32)
    o_ref[...] = (out + b2_ref[...]).astype(o_ref.dtype)


def dqn_forward(x, w1, b1, w2, b2, *, block_b=4096, small_batch_threshold=1024):
    """x: [B, S]; w1: [S, H]; b1: [1, H]; w2: [H, A]; b2: [1, A] -> [B, A].

    Note: the code path taken depends on B at trace time; pin B (or the
    threshold/block_b knobs) for reproducible benchmarking under jit.
    """
    B, S = x.shape
    H = w1.shape[1]
    A = w2.shape[1]
    out_shape = jax.ShapeDtypeStruct((B, A), jnp.float32)

    if B <= small_batch_threshold:
        # Tiny / per-step inference path: one VMEM block, no grid, no
        # per-step pipeline prologue/epilogue.
        return pl.pallas_call(dqn_kernel, out_shape=out_shape)(x, w1, b1, w2, b2)

    # Replay-minibatch path: stream x / out in row tiles, keep the ~5 KB of
    # parameters VMEM-resident (constant index maps), and shard batch tiles
    # across TensorCores on v7x.  Always emit >= 2 tiles so the second core
    # gets work; tile rows are a multiple of 8 (sublane constraint).  The
    # last tile may be ragged -- Pallas masks the out-of-bounds writeback.
    half = -(-B // 2)                              # ceil(B / 2)
    tb = max(8, min(block_b, ((half + 7) // 8) * 8))
    n_tiles = pl.cdiv(B, tb)

    return pl.pallas_call(
        dqn_kernel,
        out_shape=out_shape,
        grid=(n_tiles,),
        in_specs=[
            pl.BlockSpec((tb, S), lambda i: (i, 0)),   # streamed activations
            pl.BlockSpec((S, H), lambda i: (0, 0)),    # resident weights
            pl.BlockSpec((1, H), lambda i: (0, 0)),
            pl.BlockSpec((H, A), lambda i: (0, 0)),
            pl.BlockSpec((1, A), lambda i: (0, 0)),
        ],
        out_specs=pl.BlockSpec((tb, A), lambda i: (i, 0)),
        compiler_params=pltpu.CompilerParams(
            dimension_semantics=("parallel",)),
    )(x, w1, b1, w2, b2)


def init_dqn_params(key, state_space_dim, action_space_dim, hidden=32):
    """Deterministic init mimicking nn.Linear's U(-1/sqrt(fan_in), 1/sqrt(fan_in)).

    Weights are created ONCE in [in, out] layout (transpose of PyTorch's
    [out, in]) so the kernel does plain x @ W; no per-call reformatting.
    """
    k1, k2, k3, k4 = jax.random.split(key, 4)
    lim1 = 1.0 / jnp.sqrt(jnp.float32(state_space_dim))
    lim2 = 1.0 / jnp.sqrt(jnp.float32(hidden))
    w1 = jax.random.uniform(k1, (state_space_dim, hidden), jnp.float32, -lim1, lim1)
    b1 = jax.random.uniform(k2, (1, hidden), jnp.float32, -lim1, lim1)
    w2 = jax.random.uniform(k3, (hidden, action_space_dim), jnp.float32, -lim2, lim2)
    b2 = jax.random.uniform(k4, (1, action_space_dim), jnp.float32, -lim2, lim2)
    return w1, b1, w2, b2


if __name__ == "__main__":
    key = jax.random.PRNGKey(0)
    k_params, k_x1, k_x2 = jax.random.split(key, 3)

    state_space_dim = 4      # e.g. CartPole-like state
    action_space_dim = 2
    hidden = 32

    w1, b1, w2, b2 = init_dqn_params(k_params, state_space_dim,
                                     action_space_dim, hidden)

    def ref_fn(x):
        return jnp.maximum(x @ w1 + b1, 0.0) @ w2 + b2

    # Case 1: tiny batch -> grid-less single-block (latency) path.
    x_small = jax.random.normal(k_x1, (8, state_space_dim), jnp.float32)
    out_small = jax.block_until_ready(dqn_forward(x_small, w1, b1, w2, b2))
    assert out_small.shape == (8, action_space_dim)
    assert jnp.allclose(out_small, ref_fn(x_small), atol=1e-5, rtol=1e-5)

    # Case 2: tiled batch path exercised at a SMALL shape by overriding the
    # threshold/tile knobs (40 rows, 16-row tiles -> grid=(3,) with a ragged
    # last tile, no jnp.pad).  Production default is block_b=4096; the tiny
    # tile here is only to test the grid + ragged-writeback code path.
    x_big = jax.random.normal(k_x2, (40, state_space_dim), jnp.float32)
    out_big = jax.block_until_ready(
        dqn_forward(x_big, w1, b1, w2, b2, block_b=16, small_batch_threshold=0))
    assert out_big.shape == (40, action_space_dim)
    assert jnp.allclose(out_big, ref_fn(x_big), atol=1e-5, rtol=1e-5)

    print("KERNEL_OK")
</pallas_src>

<mosaic_0001>
module attributes {stable_mosaic.version = 11 : i64} {
  func.func @dqn_kernel(%arg0: memref<8x4xf32, #tpu.memory_space<vmem>>, %arg1: memref<4x32xf32, #tpu.memory_space<vmem>>, %arg2: memref<1x32xf32, #tpu.memory_space<vmem>>, %arg3: memref<32x2xf32, #tpu.memory_space<vmem>>, %arg4: memref<1x2xf32, #tpu.memory_space<vmem>>, %arg5: memref<8x2xf32, #tpu.memory_space<vmem>>) attributes {dimension_semantics = [], scalar_prefetch = 0 : i64, scratch_operands = 0 : i64, tpu.core_type = #tpu.core_type<tc>} {
    %c0 = arith.constant 0 : index
    %c0_0 = arith.constant 0 : index
    %0 = vector.load %arg0[%c0, %c0_0] : memref<8x4xf32, #tpu.memory_space<vmem>>, vector<8x4xf32>
    %c0_1 = arith.constant 0 : index
    %c0_2 = arith.constant 0 : index
    %1 = vector.load %arg1[%c0_1, %c0_2] : memref<4x32xf32, #tpu.memory_space<vmem>>, vector<4x32xf32>
    %cst = arith.constant dense<0.000000e+00> : vector<8x32xf32>
    %2 = tpu.matmul %0, %1, %cst {dimension_numbers = #tpu.dot_dimension_numbers<[1], [0], [0], [1], [0, 0, 1, 1], [], []>} : vector<8x4xf32>, vector<4x32xf32>, vector<8x32xf32> -> vector<8x32xf32>
    %c0_3 = arith.constant 0 : index
    %c0_4 = arith.constant 0 : index
    %3 = vector.load %arg2[%c0_3, %c0_4] : memref<1x32xf32, #tpu.memory_space<vmem>>, vector<1x32xf32>
    %4 = vector.broadcast %3 : vector<1x32xf32> to vector<8x32xf32>
    %5 = arith.addf %2, %4 : vector<8x32xf32>
    %cst_5 = arith.constant 0.000000e+00 : f32
    %6 = vector.broadcast %cst_5 : f32 to vector<8x32xf32>
    %7 = arith.maximumf %5, %6 : vector<8x32xf32>
    %c0_6 = arith.constant 0 : index
    %c0_7 = arith.constant 0 : index
    %8 = vector.load %arg3[%c0_6, %c0_7] : memref<32x2xf32, #tpu.memory_space<vmem>>, vector<32x2xf32>
    %cst_8 = arith.constant dense<0.000000e+00> : vector<8x2xf32>
    %9 = tpu.matmul %7, %8, %cst_8 {dimension_numbers = #tpu.dot_dimension_numbers<[1], [0], [0], [1], [0, 0, 1, 1], [], []>} : vector<8x32xf32>, vector<32x2xf32>, vector<8x2xf32> -> vector<8x2xf32>
    %c0_9 = arith.constant 0 : index
    %c0_10 = arith.constant 0 : index
    %10 = vector.load %arg4[%c0_9, %c0_10] : memref<1x2xf32, #tpu.memory_space<vmem>>, vector<1x2xf32>
    %11 = vector.broadcast %10 : vector<1x2xf32> to vector<8x2xf32>
    %12 = arith.addf %9, %11 : vector<8x2xf32>
    %c0_11 = arith.constant 0 : index
    %c0_12 = arith.constant 0 : index
    %13 = vector.load %arg5[%c0_11, %c0_12] : memref<8x2xf32, #tpu.memory_space<vmem>>, vector<8x2xf32>
    tpu.vector_store %arg5[%c0_11, %c0_12], %12 {strides = array<i32>} : memref<8x2xf32, #tpu.memory_space<vmem>>, vector<8x2xf32>,
    return
  }
}

</mosaic_0001>

<bundles_post_ra>
// kernel: tpu_custom_call.1
= control target key start
LH: loop header
LB: loop body
LE: loop exit
PB: predicated region body
PF: predicated region fallthrough
CT: control target
= control target key end

     0   :  { %vm33_vm0 = vcmask 1043456   ;;  %vm29_vm1 = vcmask 31744   ;;  %v229_v0 = vmov 0.0   ;;  %vm230_vm2 = vmmov 0   ;;  %s288_s1 = inlined_call_operand.vmem [shape: f32[4,32], index: 1, kind: input, shape index: {}]   ;;  %s289_s0 = inlined_call_operand.vmem [shape: f32[8,4], index: 0, kind: input, shape index: {}]   ;;  %s290_s3 = inlined_call_operand.vmem [shape: f32[32,2], index: 3, kind: input, shape index: {}]   ;;  %s291_s2 = inlined_call_operand.vmem [shape: f32[1,32], index: 2, kind: input, shape index: {}]   ;;  %s292_s4 = inlined_call_operand.vmem [shape: f32[1,2], index: 4, kind: input, shape index: {}]   ;;  %s293_s5 = inlined_call_operand.vmem [shape: f32[8,2], index: 5, kind: output, shape index: {}]  }
   0x1   :  { %211 = vmatprep.subr.mxu0 %v229_v0  ;;  %v21_v1 = vld [vmem:[%s288_s1] sm:$0xf]  ;;  %213 = vmatprep.mubr.msk.f32.mxu0 %vm230_vm2, %v229_v0  ;;  %v111_v3 = vld [vmem:[%s290_s3 + $0x18] sm:$0xff]  ;;  %v110_v4 = vld [vmem:[%s290_s3 + $0x10] sm:$0xff]  ;;  %vm119_vm3 = vcmask 261120   ;;  %vm193_vm4 = vcmask 15360  }
   0x2   :  { %v20_v2 = vld [vmem:[%s289_s0] sm:$0xff]  ;;  %212 = vmatpush3.msk.msra.mxu0 %vm33_vm0, %v21_v1  ;;  %216 = vmatprep.subr.mxu1 %v229_v0  ;;  %v109_v5 = vld [vmem:[%s290_s3 + $0x8] sm:$0xff] }
   0x3   :  { %214 = vmatmul.mubr.msk.f32.vlgmr.msra.gmra.mxu0 %vm29_vm1, %v20_v2  ;;  %217 = vmatpush3.msra.mxu1 %v111_v3  ;;  %v108_v6 = vld [vmem:[%s290_s3] sm:$0xff] }
   0x4   :  { %218 = vmatprep.subr.mxu1 %v229_v0  ;;  %224 = vmatprep.mubr.msk.f32.mxu1 %vm230_vm2, %v229_v0  ;;  %v199_v7 = vld [vmem:[%s291_s2] ss:$0 sm:$0xff] }
   0x5   :  { %219 = vmatpush3.msra.mxu1 %v110_v4  ;;  %v202_v12 = vld [vmem:[%s292_s4] ss:$0 sm:$0xff] }
   0x6   :  { %220 = vmatprep.subr.mxu1 %v229_v0 }
   0x7   :  { %221 = vmatpush3.msra.mxu1 %v109_v5 }
   0x8   :  { %222 = vmatprep.subr.mxu1 %v229_v0 }
   0x9   :  { %223 = vmatpush3.msra.mxu1 %v108_v6 }
  0xc3   :  { %v103_v8 = vpop.f32.mrf.mxu0 }
  0xc4   :  { %v104_v9 = vadd.f32 %v199_v7, %v103_v8 }
  0xc5   :  { %v215_v10 = vpop.f32.mrf.mxu0 }
  0xc6   :  { %v107_v11 = vmax.f32 %v104_v9, 0.0 }
  0xc8   :  { %225 = vmatmul.mubr.msk.f32.vlgmr.msra.gmra.mxu1 %vm119_vm3, %v107_v11 }
 0x188   :  { %v189_v13 = vpop.f32.mrf.mxu1 }
 0x189   :  { %v190_v14 = vadd.f32 %v202_v12, %v189_v13 }
 0x18a   :  { %v226_v15 = vpop.f32.mrf.mxu1 }
 0x18b   :  { %194 = vst.msk [vmem:[%s293_s5] sm:$0xff] %vm193_vm4, %v190_v14 }

</bundles_post_ra>
